<compile_context>
chip_gen: v6e
topology: v6e:2x2x1
jax: 0.10.0
libtpu: 0.0.40
codegen_flags: <defaults>
</compile_context>

<pallas_src>
import functools

import jax
import jax.numpy as jnp
from jax.experimental import pallas as pl
from jax.experimental.pallas import tpu as pltpu

BN_EPS = 1e-5
BN_SCALE = (1.0 + BN_EPS) ** -0.5          # eval-mode BN with default stats
VMEM_LIMIT = 32 * 1024 * 1024              # safe on v5e/v6e/v7x


# ----------------------------------------------------------------------------
# small helpers
# ----------------------------------------------------------------------------
def _round_up(x, m):
    return ((x + m - 1) // m) * m


def _choose_tk(K):
    if K <= 2048:
        return _round_up(K, 128)
    # largest tk <= 6272 that divides K exactly (keeps blocks big -> per-step
    # DMA overhead small on the mem-bound fc1 weight stream)
    for mult in range(49, 3, -1):
        tk = mult * 128
        if K % tk == 0:
            return tk
    return 2048


def _choose_tn(N):
    return 256 if N >= 512 else 128


def _choose_tm(M):
    return 256 if M >= 256 else _round_up(max(M, 1), 8)


# ----------------------------------------------------------------------------
# Fused matmul + bias + optional ReLU Pallas kernels (bf16 in, f32 accumulate)
# ----------------------------------------------------------------------------
def _matmul_bias_kernel(x_ref, w_ref, b_ref, o_ref, acc_ref, *, relu):
    """Multi-K-step variant: accumulate in VMEM scratch, finalize on last k."""
    @pl.when(pl.program_id(2) == 0)
    def _init():
        acc_ref[...] = jnp.zeros_like(acc_ref)

    acc_ref[...] += jnp.dot(x_ref[...], w_ref[...],
                            preferred_element_type=jnp.float32)

    @pl.when(pl.program_id(2) == pl.num_programs(2) - 1)
    def _fin():
        y = acc_ref[...] + b_ref[...]
        if relu:
            y = jnp.maximum(y, 0.0)
        o_ref[...] = y.astype(o_ref.dtype)


def _matmul_bias_kernel_single(x_ref, w_ref, b_ref, o_ref, *, relu):
    """Single-K-step variant: no scratch accumulator, no init/finalize gates."""
    y = jnp.dot(x_ref[...], w_ref[...],
                preferred_element_type=jnp.float32) + b_ref[...]
    if relu:
        y = jnp.maximum(y, 0.0)
    o_ref[...] = y.astype(o_ref.dtype)


def prepare_linear(w, b):
    """Pad + cast a Linear layer once at init (BN/scale already folded in)."""
    K, N = w.shape
    tk, tn = _choose_tk(K), _choose_tn(N)
    Kp, Np = _round_up(K, tk), _round_up(N, tn)
    wp = jnp.pad(w.astype(jnp.float32), ((0, Kp - K), (0, Np - N))).astype(jnp.bfloat16)
    bp = jnp.pad(b.astype(jnp.float32).reshape(1, N), ((0, 0), (0, Np - N)))
    return {"w": wp, "b": bp, "K": K, "N": N, "tk": tk, "tn": tn}


def linear_fused(x, layer, *, relu):
    """y = act(x @ W + b) with pre-padded bf16 W and f32 bias."""
    M, K = x.shape
    assert K == layer["K"]
    wp, bp = layer["w"], layer["b"]
    Kp, Np = wp.shape
    tk, tn = layer["tk"], layer["tn"]
    tm = _choose_tm(M)
    Mp = _round_up(M, tm)

    xp = x.astype(jnp.bfloat16)
    if Mp != M or Kp != K:
        xp = jnp.pad(xp, ((0, Mp - M), (0, Kp - K)))

    gk = Kp // tk
    grid = (Mp // tm, Np // tn, gk)
    if gk == 1:
        kernel = functools.partial(_matmul_bias_kernel_single, relu=relu)
        scratch = []
    else:
        kernel = functools.partial(_matmul_bias_kernel, relu=relu)
        scratch = [pltpu.VMEM((tm, tn), jnp.float32)]

    out = pl.pallas_call(
        kernel,
        out_shape=jax.ShapeDtypeStruct((Mp, Np), jnp.bfloat16),
        grid_spec=pltpu.PrefetchScalarGridSpec(
            num_scalar_prefetch=0,
            grid=grid,
            in_specs=[
                pl.BlockSpec((tm, tk), lambda i, j, k: (i, k)),
                pl.BlockSpec((tk, tn), lambda i, j, k: (k, j)),
                pl.BlockSpec((1, tn), lambda i, j, k: (0, j)),
            ],
            out_specs=pl.BlockSpec((tm, tn), lambda i, j, k: (i, j)),
            scratch_shapes=scratch,
        ),
        compiler_params=pltpu.CompilerParams(
            dimension_semantics=("parallel", "parallel", "arbitrary"),
            vmem_limit_bytes=VMEM_LIMIT),
    )(xp, wp, bp)

    if Mp != M or Np != layer["N"]:
        out = out[:M, :layer["N"]]
    return out


# ----------------------------------------------------------------------------
# Fused multi-layer heads (whole tiny MLP in one pallas_call, weights in VMEM)
# ----------------------------------------------------------------------------
def _speed_head_kernel(s_ref, wa_ref, ba_ref, wb_ref, bb_ref, o_ref):
    h1 = jnp.dot(s_ref[...], wa_ref[...], preferred_element_type=jnp.float32)
    h1 = jnp.maximum(h1 + ba_ref[...], 0.0).astype(jnp.bfloat16)
    y = jnp.dot(h1, wb_ref[...], preferred_element_type=jnp.float32)
    y = jnp.maximum(y + bb_ref[...], 0.0)
    o_ref[...] = y.astype(o_ref.dtype)


def speed_head(speed, la, lb):
    """fc1_speed -> ReLU -> fc2_speed -> ReLU fused into one kernel."""
    M, K = speed.shape
    Mp = _round_up(max(M, 1), 8)
    Kp = la["w"].shape[0]
    Np = lb["w"].shape[1]
    sp = jnp.pad(speed.astype(jnp.bfloat16), ((0, Mp - M), (0, Kp - K)))

    out = pl.pallas_call(
        _speed_head_kernel,
        out_shape=jax.ShapeDtypeStruct((Mp, Np), jnp.bfloat16),
        grid_spec=pltpu.PrefetchScalarGridSpec(
            num_scalar_prefetch=0,
            grid=(1,),
            in_specs=[
                pl.BlockSpec((Mp, Kp), lambda i: (0, 0)),
                pl.BlockSpec(la["w"].shape, lambda i: (0, 0)),
                pl.BlockSpec(la["b"].shape, lambda i: (0, 0)),
                pl.BlockSpec(lb["w"].shape, lambda i: (0, 0)),
                pl.BlockSpec(lb["b"].shape, lambda i: (0, 0)),
            ],
            out_specs=pl.BlockSpec((Mp, Np), lambda i: (0, 0)),
        ),
        compiler_params=pltpu.CompilerParams(vmem_limit_bytes=VMEM_LIMIT),
    )(sp, la["w"], la["b"], lb["w"], lb["b"])
    return out[:M, :lb["N"]]


def _branch_head_kernel(h_ref, wa_ref, ba_ref, wb_ref, bb_ref,
                        wc_ref, bc_ref, o_ref):
    h = h_ref[...]
    h1 = jnp.dot(h, wa_ref[...], preferred_element_type=jnp.float32)
    h1 = (h1 + ba_ref[...]).astype(jnp.bfloat16)               # branch linear (no ReLU)
    h2 = jnp.dot(h1, wb_ref[...], preferred_element_type=jnp.float32)
    h2 = jnp.maximum(h2 + bb_ref[...], 0.0).astype(jnp.bfloat16)   # fc4 + ReLU
    y = jnp.dot(h2, wc_ref[...], preferred_element_type=jnp.float32)
    o_ref[...] = (y + bc_ref[...]).astype(o_ref.dtype)         # fc5 (no ReLU)


def branch_head(h, la, lb, lc):
    """branch -> fc4 -> ReLU -> fc5 fused into one kernel."""
    M = h.shape[0]
    Mp = _round_up(max(M, 1), 8)
    hp = h.astype(jnp.bfloat16)
    if Mp != M:
        hp = jnp.pad(hp, ((0, Mp - M), (0, 0)))
    Kp = hp.shape[1]
    Np = lc["w"].shape[1]

    out = pl.pallas_call(
        _branch_head_kernel,
        out_shape=jax.ShapeDtypeStruct((Mp, Np), jnp.bfloat16),
        grid_spec=pltpu.PrefetchScalarGridSpec(
            num_scalar_prefetch=0,
            grid=(1,),
            in_specs=[
                pl.BlockSpec((Mp, Kp), lambda i: (0, 0)),
                pl.BlockSpec(la["w"].shape, lambda i: (0, 0)),
                pl.BlockSpec(la["b"].shape, lambda i: (0, 0)),
                pl.BlockSpec(lb["w"].shape, lambda i: (0, 0)),
                pl.BlockSpec(lb["b"].shape, lambda i: (0, 0)),
                pl.BlockSpec(lc["w"].shape, lambda i: (0, 0)),
                pl.BlockSpec(lc["b"].shape, lambda i: (0, 0)),
            ],
            out_specs=pl.BlockSpec((Mp, Np), lambda i: (0, 0)),
        ),
        compiler_params=pltpu.CompilerParams(vmem_limit_bytes=VMEM_LIMIT),
    )(hp, la["w"], la["b"], lb["w"], lb["b"], lc["w"], lc["b"])
    return out[:M, :lc["N"]]


# ----------------------------------------------------------------------------
# Fused conv kernel for layers 2..8: in-kernel im2col (shifted-row matmuls)
# over a VMEM-resident per-batch feature map; bias + ReLU fused.
# ----------------------------------------------------------------------------
def _conv_tap_kernel(*refs, taps, n_parity):
    x_refs = refs[:n_parity]
    w_ref = refs[n_parity]
    b_ref = refs[n_parity + 1]
    o_ref = refs[n_parity + 2]
    acc_ref = refs[n_parity + 3]
    m2 = o_ref.shape[1]

    for idx, (p, start, t) in enumerate(taps):
        lhs = x_refs[p][0, start:start + m2, :]          # (M2, Cin) bf16
        wk = w_ref[t]                                    # (Cin, Cout) bf16
        contrib = jnp.dot(lhs, wk, preferred_element_type=jnp.float32)
        if idx == 0:
            acc_ref[...] = contrib
        else:
            acc_ref[...] += contrib

    y = jnp.maximum(acc_ref[...] + b_ref[...], 0.0)
    o_ref[0] = y.astype(o_ref.dtype)


def conv_fused(x, layer):
    """Conv2d + folded-BN + ReLU on NHWC bf16 input via a fused Pallas kernel."""
    w_taps, shift = layer["w"], layer["b"]               # (KH*KW,Cin,Cout), (1,Cout)
    k, s, pad = layer["k"], layer["stride"], layer["pad"]
    KH = KW = k
    N, H, Wd, Cin = x.shape
    Cout = w_taps.shape[-1]
    OH = (H + 2 * pad - KH) // s + 1
    OW = (Wd + 2 * pad - KW) // s + 1

    xp = jnp.pad(x, ((0, 0), (pad, pad), (pad, pad), (0, 0)))
    h0max, w0max = (KH - 1) // s, (KW - 1) // s
    HH, WW = h0max + OH + 1, w0max + OW                  # +1 row: wrap-safety pad

    # stride-parity split (identity for stride 1); each parity is a small
    # contiguous (N, HH*WW, Cin) slab so all in-kernel slices are contiguous.
    parities = []
    for a in range(s):
        for b in range(s):
            xab = xp[:, a::s, b::s, :]
            ph = max(0, HH - xab.shape[1])
            pw = max(0, WW - xab.shape[2])
            xab = jnp.pad(xab, ((0, 0), (0, ph), (0, pw), (0, 0)))[:, :HH, :WW, :]
            parities.append(xab.reshape(N, HH * WW, Cin))

    M2 = OH * WW
    taps = []
    for kh in range(KH):
        for kw in range(KW):
            p = (kh % s) * s + (kw % s)
            start = (kh // s) * WW + (kw // s)
            taps.append((p, start, kh * KW + kw))
    n_par = s * s

    in_specs = ([pl.BlockSpec((1, HH * WW, Cin), lambda n: (n, 0, 0))] * n_par
                + [pl.BlockSpec((KH * KW, Cin, Cout), lambda n: (0, 0, 0)),
                   pl.BlockSpec((1, Cout), lambda n: (0, 0))])

    out = pl.pallas_call(
        functools.partial(_conv_tap_kernel, taps=tuple(taps), n_parity=n_par),
        out_shape=jax.ShapeDtypeStruct((N, M2, Cout), jnp.bfloat16),
        grid_spec=pltpu.PrefetchScalarGridSpec(
            num_scalar_prefetch=0,
            grid=(N,),
            in_specs=in_specs,
            out_specs=pl.BlockSpec((1, M2, Cout), lambda n: (n, 0, 0)),
            scratch_shapes=[pltpu.VMEM((M2, Cout), jnp.float32)],
        ),
        compiler_params=pltpu.CompilerParams(
            dimension_semantics=("parallel",),
            vmem_limit_bytes=VMEM_LIMIT),
    )(*parities, w_taps, shift)

    return out.reshape(N, OH, WW, Cout)[:, :, :OW, :]


# ----------------------------------------------------------------------------
# Layer 1 (5x5, stride 2, Cin=3): tiny im2col in XLA + fused Pallas matmul.
# (Cin=3 would waste VMEM / MXU in the tap kernel; the patch tensor is ~1.4 MB.)
# ----------------------------------------------------------------------------
def conv1_forward(x, layer, *, k=5, stride=2, pad=4):
    N, H, Wd, Cin = x.shape
    OH = (H + 2 * pad - k) // stride + 1
    OW = (Wd + 2 * pad - k) // stride + 1
    xp = jnp.pad(x, ((0, 0), (pad, pad), (pad, pad), (0, 0)))
    cols = []
    for kh in range(k):
        for kw in range(k):
            cols.append(xp[:, kh:kh + stride * OH:stride,
                           kw:kw + stride * OW:stride, :])
    patches = jnp.concatenate(cols, axis=-1).reshape(N * OH * OW, k * k * Cin)
    y = linear_fused(patches, layer, relu=True)
    return y.reshape(N, OH, OW, -1)


# ----------------------------------------------------------------------------
# Deterministic parameter init (synthetic; shapes match the torch module)
# ----------------------------------------------------------------------------
CONV_CFG = [(3, 32, 5, 2, 4), (32, 32, 3, 1, 2), (32, 64, 3, 2, 2),
            (64, 64, 3, 1, 2), (64, 128, 3, 2, 2), (128, 128, 3, 1, 2),
            (128, 256, 3, 1, 2), (256, 256, 3, 1, 2)]


def init_params(key, output_dim):
    keys = iter(jax.random.split(key, 80))
    params = {}

    # TODO(synk): if real trained weights are loaded, permute torch conv weights
    # (Cout,Cin,KH,KW)->(KH,KW,Cin,Cout) and refold actual BN running stats.
    def conv_wb(cin, cout, k):
        fan_in = cin * k * k
        w = jax.random.normal(next(keys), (k, k, cin, cout), jnp.float32) / jnp.sqrt(fan_in)
        b = jax.random.normal(next(keys), (cout,), jnp.float32) * 0.01
        return w * BN_SCALE, b * BN_SCALE          # fold eval-mode BN

    w1, b1 = conv_wb(*CONV_CFG[0][:3])
    params["conv1"] = prepare_linear(w1.reshape(5 * 5 * 3, 32), b1)

    convs = []
    for (cin, cout, k, s, p) in CONV_CFG[1:]:
        w, b = conv_wb(cin, cout, k)
        convs.append({
            "w": w.reshape(k * k, cin, cout).astype(jnp.bfloat16),
            "b": b.reshape(1, cout).astype(jnp.float32),
            "k": k, "stride": s, "pad": p,
        })
    params["convs"] = convs

    def lin(cin, cout):
        w = jax.random.normal(next(keys), (cin, cout), jnp.float32) / jnp.sqrt(cin)
        b = jax.random.normal(next(keys), (cout,), jnp.float32) * 0.01
        return prepare_linear(w, b)

    params["fc1_speed"] = lin(1, 128)
    params["fc2_speed"] = lin(128, 128)
    params["fc1"] = lin(188160, 512)
    params["fc2"] = lin(512, 512)
    params["fc3"] = lin(640, 256)
    for name in ["lanefollow", "right", "left", "straight"]:
        params[name] = lin(256, 256)
        params["fc4_" + name] = lin(256, 256)
        params["fc5_" + name] = lin(256, output_dim)
    return params


# ----------------------------------------------------------------------------
# Forward pass (eval mode: Dropout = identity, BN = running stats)
# ----------------------------------------------------------------------------
def jane_forward(params, x_nchw, speed, command):
    # TODO(synk): training-mode Dropout/Dropout2d RNG not implemented (eval semantics).
    x = jnp.transpose(x_nchw.astype(jnp.bfloat16), (0, 2, 3, 1))     # NCHW -> NHWC

    x = conv1_forward(x, params["conv1"])                            # layer 1
    for layer in params["convs"]:                                    # layers 2..8
        x = conv_fused(x, layer)

    N = x.shape[0]
    feat = jnp.transpose(x, (0, 3, 1, 2)).reshape(N, -1)             # torch flatten order

    out = linear_fused(feat, params["fc1"], relu=True)
    out = linear_fused(out, params["fc2"], relu=True)

    sp = speed_head(speed, params["fc1_speed"], params["fc2_speed"])

    out = jnp.concatenate([out, sp], axis=1)
    out = linear_fused(out, params["fc3"], relu=True)

    def make_branch(name):
        def f(h):
            return branch_head(h, params[name], params["fc4_" + name],
                               params["fc5_" + name])
        return f

    branch_fns = [make_branch(n) for n in ("lanefollow", "right", "left", "straight")]
    cmd = jnp.asarray(command, jnp.float32)
    idx = jnp.where(cmd == 2.0, 0,
          jnp.where(cmd == 3.0, 1,
          jnp.where(cmd == 4.0, 2, 3))).astype(jnp.int32)
    sel = jax.lax.switch(idx, branch_fns, out).astype(jnp.float32)
    return sel[:, 0], sel[:, 1], sel[:, 2]


if __name__ == "__main__":
    key = jax.random.PRNGKey(0)
    pkey, xkey, skey = jax.random.split(key, 3)
    output_dim = 3
    params = init_params(pkey, output_dim)

    B = 2
    # NCHW input like the PyTorch module: (B, 3, 88, 200) -> flatten = 188160
    x = jax.random.normal(xkey, (B, 3, 88, 200), jnp.float32)
    speed = jax.random.normal(skey, (B, 1), jnp.float32)
    command = 3.0                                                    # -> "right" branch

    steer, throttle, brake = jane_forward(params, x, speed, command)
    jax.block_until_ready((steer, throttle, brake))
    print("KERNEL_OK")
</pallas_src>

<mosaic_0001>
module attributes {stable_mosaic.version = 11 : i64} {
  func.func @_matmul_bias_kernel_single(%arg0: i32, %arg1: i32, %arg2: i32, %arg3: memref<256x128xbf16, #tpu.memory_space<vmem>>, %arg4: memref<128x128xbf16, #tpu.memory_space<vmem>>, %arg5: memref<1x128xf32, #tpu.memory_space<vmem>>, %arg6: memref<256x128xbf16, #tpu.memory_space<vmem>>) attributes {dimension_semantics = [#tpu.dimension_semantics<parallel>, #tpu.dimension_semantics<parallel>, #tpu.dimension_semantics<arbitrary>], iteration_bounds = array<i64: 37, 1, 1>, scalar_prefetch = 0 : i64, scratch_operands = 0 : i64, tpu.core_type = #tpu.core_type<tc>, window_params = [{transform_indices = @transform_0, window_bounds = array<i64: 256, 128>}, {transform_indices = @transform_1, window_bounds = array<i64: 128, 128>}, {transform_indices = @transform_2, window_bounds = array<i64: 1, 128>}, {transform_indices = @transform_3, window_bounds = array<i64: 256, 128>}]} {
    %c0 = arith.constant 0 : index
    %c0_0 = arith.constant 0 : index
    %0 = vector.load %arg3[%c0, %c0_0] : memref<256x128xbf16, #tpu.memory_space<vmem>>, vector<256x128xbf16>
    %c0_1 = arith.constant 0 : index
    %c0_2 = arith.constant 0 : index
    %1 = vector.load %arg4[%c0_1, %c0_2] : memref<128x128xbf16, #tpu.memory_space<vmem>>, vector<128x128xbf16>
    %cst = arith.constant dense<0.000000e+00> : vector<256x128xf32>
    %2 = tpu.matmul %0, %1, %cst {dimension_numbers = #tpu.dot_dimension_numbers<[1], [0], [0], [1], [0, 0, 1, 1], [], []>} : vector<256x128xbf16>, vector<128x128xbf16>, vector<256x128xf32> -> vector<256x128xf32>
    %c0_3 = arith.constant 0 : index
    %c0_4 = arith.constant 0 : index
    %3 = vector.load %arg5[%c0_3, %c0_4] : memref<1x128xf32, #tpu.memory_space<vmem>>, vector<1x128xf32>
    %4 = vector.broadcast %3 : vector<1x128xf32> to vector<256x128xf32>
    %5 = arith.addf %2, %4 : vector<256x128xf32>
    %cst_5 = arith.constant 0.000000e+00 : f32
    %6 = vector.broadcast %cst_5 : f32 to vector<256x128xf32>
    %7 = arith.maximumf %5, %6 : vector<256x128xf32>
    %8 = arith.truncf %7 : vector<256x128xf32> to vector<256x128xbf16>
    %c0_6 = arith.constant 0 : index
    %c0_7 = arith.constant 0 : index
    %9 = vector.load %arg6[%c0_6, %c0_7] : memref<256x128xbf16, #tpu.memory_space<vmem>>, vector<256x128xbf16>
    tpu.vector_store %arg6[%c0_6, %c0_7], %8 {strides = array<i32>} : memref<256x128xbf16, #tpu.memory_space<vmem>>, vector<256x128xbf16>,
    return
  }
  func.func @transform_0(%arg0: i32, %arg1: i32, %arg2: i32) -> (i32, i32) {
    %c0_i32 = arith.constant 0 : i32
    return %arg0, %arg2 : i32, i32
  }
  func.func @transform_1(%arg0: i32, %arg1: i32, %arg2: i32) -> (i32, i32) {
    %c0_i32 = arith.constant 0 : i32
    return %arg2, %arg1 : i32, i32
  }
  func.func @transform_2(%arg0: i32, %arg1: i32, %arg2: i32) -> (i32, i32) {
    %c0_i32 = arith.constant 0 : i32
    %c0_i32_0 = arith.constant 0 : i32
    return %c0_i32, %arg1 : i32, i32
  }
  func.func @transform_3(%arg0: i32, %arg1: i32, %arg2: i32) -> (i32, i32) {
    %c0_i32 = arith.constant 0 : i32
    return %arg0, %arg1 : i32, i32
  }
}

</mosaic_0001>

<bundles_post_ra>
// kernel: tpu_custom_call.1
= control target key start
LH: loop header
LB: loop body
LE: loop exit
PB: predicated region body
PF: predicated region fallthrough
CT: control target
= control target key end

     0   :  { %8 = vsyncpa [#allocation3], 0  ;;  %s1807_s0 = inlined_call_operand.hbm [shape: bf16[9472,128], index: 0, kind: input, shape index: {}]   ;;  %s1808_s1 = inlined_call_operand.hbm [shape: bf16[128,128], index: 1, kind: input, shape index: {}]   ;;  %s1809_s2 = inlined_call_operand.hbm [shape: f32[1,128], index: 2, kind: input, shape index: {}]   ;;  %s1810_s3 = inlined_call_operand.hbm [shape: bf16[9472,128], index: 3, kind: output, shape index: {}]  }
   0x1   :  { %10 = vsyncpa [#allocation3 + $0x1], 0 }
   0x2   :  { %11 = vsyncpa [#allocation6], 0 }
   0x3   :  { %12 = vsyncpa [#allocation4], 0 }
   0x4   :  { %14 = vsyncpa [#allocation4 + $0x1], 0  ;;  %s1540_s12 = smov 0   ;;  %s1542_s13 = smov 0  }
   0x5   :  { %s1544_s14 = smov 0   ;;  %s1546_s15 = smov 0  }
   0x6   :  { %s1548_s16 = smov 0   ;;  %s1550_s17 = smov 0  }
   0x7 LB: > { %s942_s18 = sadd.s32 4294967295, %s1510_s17   ;;  %s943_s19 = sadd.s32 4294967294, %s1510_s17   ;;  %s1510_s17 = sphi %s1550_s17, %s20_s17   ;;  %s1506_s16 = sphi %s1548_s16, %s1826_s16   ;;  %s1502_s15 = sphi %s1546_s15, %s1825_s15   ;;  %s1498_s14 = sphi %s1544_s14, %s1824_s14   ;;  %s1494_s13 = sphi %s1542_s13, %s1823_s13   ;;  %s1490_s12 = sphi %s1540_s12, %s1822_s12  }
   0x8   : > { %p61_p0 = scmp.ne.s32.totalorder %s1494_s13, %s1490_s12  ;;  %p1574_p1 = scmp.eq.s32.totalorder %s942_s18, 0 }
   0x9   : > { %p1578_p2 = scmp.eq.s32.totalorder %s942_s18, 36  ;;  %p147_p3 = scmp.eq.s32.totalorder %s943_s19, 36 }
   0xa   : > { %p1584_p4 = por %p1574_p1, %p61_p0  ;;  %p944_p5 = scmp.ge.s32.totalorder %s1510_s17, 1 }
   0xb   : > { %p1589_p6 = por %p147_p3, %p61_p0  ;;  %p154_p7 = scmp.lt.s32.totalorder %s1510_s17, 38 }
   0xc   : > { %s1512_s25 = smov [#allocation5]   ;;  %s1513_s28 = smov [#allocation7]  }
   0xd   : > { %s1815_s23 = scalar_select %p1589_p6, 1, 0 }
   0xe   : > { %p1594_p8 = pnand %p944_p5, %p154_p7  ;;  %s170_s26 = sshll.u32 %s1512_s25, 4  ;;  %s171_s26 = int_to_ptr.vmem [resolvable:$true] %s170_s26 }
   0xf   : > { %s186_s29 = sshll.u32 %s1513_s28, 4  ;;  %s1357_s30 = scalar_lea.vmem %s171_s26, 1024  ;;  %s187_s29 = int_to_ptr.vmem [resolvable:$true] %s186_s29 }
  0x10   : > { %p1247_p9 = pneg %p1594_p8  ;;  %p1358_p12 = scmp.ne.s32.totalorder %s171_s26, %s1357_s30 }
  0x11   : > { %p1365_p3 = scmp.lt.s32.totalorder %s171_s26, %s171_s26  ;;  %p1366_p5 = scmp.lt.s32.totalorder %s1357_s30, %s1357_s30 }
  0x12   : > { %p1602_p10 = pnand %p1247_p9, %p1574_p1 }
  0x13   : > { %p1367_p7 = por %p1366_p5, %p1365_p3 }
  0x14   : > { %p1348_p11 = pneg %p1602_p10 }
  0x16   : > { %p1360_p13 = pnand %p1358_p12, %p1348_p11 }
  0x18   : > { %p1361_p0 = pneg %p1360_p13 }
  0x1a   : > { %p1368_p9 = pnand %p1367_p7, %p1361_p0 }
  0x1c   : > { %1371 = shalt.err (!%p1368_p9)
}
  0x1d   : > { %s1811_s4 = smov 64   ;;  %s1515_s5 = smov 4  }
  0x1e   : > { %1250 = dma.hbm_to_vmem [thread:$0]  (!%p1602_p10), %s1808_s1, 1024, %s171_s26, [#allocation6], %s1811_s4, %s1811_s4, %s1515_s5  }
  0x1f   : > { %s1383_s8 = scalar_lea.vmem %s187_s29, 16  ;;  %s1390_s9 = scalar_lea.vmem %s187_s29, 32 }
  0x20   : > { %p1384_p12 = scmp.ne.s32.totalorder %s187_s29, %s1383_s8  ;;  %p1391_p0 = scmp.lt.s32.totalorder %s187_s29, %s187_s29 }
  0x21   : > { %p1392_p5 = scmp.lt.s32.totalorder %s1390_s9, %s1383_s8 }
  0x22   : > { %p1386_p13 = pnand %p1384_p12, %p1348_p11 }
  0x23   : > { %p1393_p7 = por %p1392_p5, %p1391_p0 }
  0x24   : > { %p1387_p3 = pneg %p1386_p13 }
  0x26   : > { %p1394_p9 = pnand %p1393_p7, %p1387_p3 }
  0x28   : > { %1397 = shalt.err (!%p1394_p9)
}
  0x29   : > { %1253 = dma.hbm_to_vmem [thread:$0]  (!%p1602_p10), %s1809_s2, 16, %s187_s29, [#allocation6]  }
  0x2a   : > { %s39_s18 = sadd.s32 1, %s1506_s16  ;;  %s48_s19 = sadd.s32 1, %s1498_s14 }
  0x2b   : > { %p41_p11 = scmp.ge.s32.totalorder %s39_s18, 37  ;;  %p55_p12 = scmp.ne.s32.totalorder %s1498_s14, %s1494_s13 }
  0x2c   : > { %p56_p13 = scmp.eq.s32.totalorder %s1510_s17, 0  ;;  %p1264_p3 = scmp.lt.s32.totalorder %s1510_s17, 37 }
  0x2d   : > { %s1828_s18 = smov (%p41_p11, %s39_s18), 0  ;;  %p1637_p5 = por %p1578_p2, %p55_p12 }
  0x2e   : > { %p57_p0 = por %p56_p13, %p55_p12  ;;  %s43_s26 = ssub.s32 %s1506_s16, %s1828_s18 }
  0x2f   : > { %s197_s27 = sand.u32 1, %s1498_s14   ;;  %p46_p7 = scmp.eq.s32.totalorder %s43_s26, 0 }
  0x30   : > { %s948_s28 = sshll.u32 %s197_s27, 7  ;;  %s1018_s29 = sshll.u32 %s1506_s16, 11 }
  0x31   : > { %s1646_s30 = scalar_select %p46_p7, %s1498_s14, %s48_s19  }
  0x32   : > { %s208_s8 = scalar_lea.hbm %s1807_s0, %s1018_s29  ;;  %s201_s9 = scalar_lea.vmem [#allocation2], %s948_s28 }
  0x33   : > { %s209_s10 = sshll.u32 %s201_s9, 4  ;;  %p1653_p10 = pnand %p1264_p3, %p57_p0  ;;  %s210_s10 = int_to_ptr.vmem [resolvable:$true] %s209_s10 }
  0x34   : > { %s198_s11 = scalar_lea.sflag [#allocation3], %s197_s27  ;;  %s1411_s26 = scalar_lea.vmem %s210_s10, 2048 }
  0x35   : > { %p1400_p2 = pneg %p1653_p10  ;;  %p1412_p9 = scmp.ne.s32.totalorder %s210_s10, %s1411_s26 }
  0x36   : > { %s1516_s19 = smov [#allocation2]  }
  0x37   : > { %p1414_p11 = pnand %p1412_p9, %p1400_p2  ;;  %s1416_s4 = sshll.u32 %s1516_s19, 4  ;;  %s1417_s4 = int_to_ptr.vmem [resolvable:$false] %s1416_s4 }
  0x38   : > { %s1418_s29 = scalar_lea.vmem %s1417_s4, 4096  ;;  %p1419_p13 = scmp.lt.s32.totalorder %s210_s10, %s1417_s4 }
  0x39   : > { %p1415_p12 = pneg %p1414_p11  ;;  %p1420_p7 = scmp.lt.s32.totalorder %s1418_s29, %s1411_s26 }
  0x3b   : > { %p1421_p6 = por %p1420_p7, %p1419_p13 }
  0x3d   : > { %p1422_p3 = pnand %p1421_p6, %p1415_p12 }
  0x3f   : > { %1425 = shalt.err (!%p1422_p3)
}
  0x40   : > { %s1820_s28 = smov 64   ;;  %221 = sbr.rel (%p1594_p8) target bundleno = 348 (0x15c), region = 32 }
  0x41   : > { %1257 = dma.hbm_to_vmem [thread:$0]  (!%p1653_p10), %s208_s8, 2048, %s210_s10, %s198_s11, %s1820_s28, %s1820_s28, %s1515_s5  }
  0x42   : > { %s1667_s27 = sand.u32 (!%p1594_p8), 1, %s1494_s13  }
  0x43   : > { %s952_s4 = sshll.u32 (!%p1594_p8), %s1667_s27, 7  ;;  %s224_s6 = scalar_lea.sflag (!%p1594_p8), [#allocation3], %s1667_s27 }
  0x44   : > { %s1673_s7 = scalar_lea.vmem (!%p1594_p8), [#allocation2], %s952_s4 }
  0x45   : > { %1477 = dma.done.wait (%p1584_p4), %s224_s6, 2048  }
  0x46   : > { %1479 = vsyncadd (%p1584_p4), %s224_s6, 4294965248 }
  0x47   : > { %1481 = dma.done.wait (%p1574_p1), [#allocation6], 1040  }
  0x48   : > { %1483 = vsyncadd (%p1574_p1), [#allocation6], 4294966256  ;;  %v1322_v0 = vld [vmem:[#allocation5 + $0x38] sm:$0xff]   ;;  %v1323_v1 = vld [vmem:[#allocation5 + $0x30] sm:$0xff]   ;;  %s1713_s20 = scalar_lea.vmem [#allocation8], %s952_s4  ;;  %s1051_s22 = sshll.u32 %s1502_s15, 11 }
  0x49   : > { %1171 = vmatprep.subr.bf16.mxu0 %v1322_v0  ;;  %1219 = vmatprep.subr.bf16.mxu1 %v1322_v0  ;;  %v1324_v2 = vld [vmem:[#allocation5 + $0x28] sm:$0xff]   ;;  %v1325_v3 = vld [vmem:[#allocation5 + $0x20] sm:$0xff]   ;;  %v1326_v6 = vld [vmem:[#allocation5 + $0x18] sm:$0xff]   ;;  %s829_s24 = sshll.u32 %s1713_s20, 4  ;;  %s1754_s9 = scalar_lea.hbm %s1810_s3, %s1051_s22  ;;  %s1756_s24 = int_to_ptr.vmem [resolvable:$true] %s829_s24 }
  0x4a   : > { %1172 = vmatpush3.bf16.msra.mxu0 %v1322_v0  ;;  %1227 = vmatpush3.bf16.msra.mxu1 %v1322_v0  ;;  %v1330_v4 = vld [vmem:[%s1673_s7] sm:$0xff]   ;;  %v1327_v7 = vld [vmem:[#allocation5 + $0x10] sm:$0xff]   ;;  %v1328_v8 = vld [vmem:[#allocation5 + $0x8] sm:$0xff]   ;;  %s815_s15 = scalar_lea.sflag [#allocation4], %s1667_s27  ;;  %s1426_s10 = scalar_lea.vmem %s1756_s24, 2048 }
  0x4b   : > { %1173 = vmatprep.subr.bf16.mxu0 %v1323_v1  ;;  %1220 = vmatprep.subr.bf16.mxu1 %v1323_v1  ;;  %v1331_v5 = vld [vmem:[%s1673_s7 + $0x40] sm:$0xff]   ;;  %v1332_v10 = vld [vmem:[%s1673_s7 + $0x8] sm:$0xff]   ;;  %v1334_v12 = vld [vmem:[%s1673_s7 + $0x10] sm:$0xff]   ;;  %p1427_p1 = scmp.ne.s32.totalorder %s1756_s24, %s1426_s10  ;;  %s1517_s21 = smov [#allocation8]  }
  0x4c   : > { %1187 = vmatprep.mubr.bf16.mxu0 %v1330_v4  ;;  %1203 = vmatprep.mubr.bf16.mxu1 %v1331_v5  ;;  %v1329_v9 = vld [vmem:[#allocation5] sm:$0xff]   ;;  %v1333_v11 = vld [vmem:[%s1673_s7 + $0x48] sm:$0xff]   ;;  %v1335_v13 = vld [vmem:[%s1673_s7 + $0x50] sm:$0xff]   ;;  %s1430_s11 = sshll.u32 %s1517_s21, 4  ;;  %s1431_s11 = int_to_ptr.vmem [resolvable:$false] %s1430_s11 }
  0x4d   : > { %v1336_v14 = vld [vmem:[%s1673_s7 + $0x18] sm:$0xff]   ;;  %v1338_v16 = vld [vmem:[%s1673_s7 + $0x20] sm:$0xff]   ;;  %v1340_v18 = vld [vmem:[%s1673_s7 + $0x28] sm:$0xff]   ;;  %p1428_p4 = pnand %p1427_p1, %p1637_p5  ;;  %s1432_s26 = scalar_lea.vmem %s1431_s11, 4096 }
  0x4e   : > { %1174 = vmatpush3.bf16.msra.mxu0 %v1323_v1  ;;  %1228 = vmatpush3.bf16.msra.mxu1 %v1323_v1  ;;  %v1337_v15 = vld [vmem:[%s1673_s7 + $0x58] sm:$0xff]   ;;  %v1339_v17 = vld [vmem:[%s1673_s7 + $0x60] sm:$0xff]   ;;  %v1341_v19 = vld [vmem:[%s1673_s7 + $0x68] sm:$0xff]   ;;  %p1433_p8 = scmp.lt.s32.totalorder %s1756_s24, %s1431_s11  ;;  %p1434_p0 = scmp.lt.s32.totalorder %s1432_s26, %s1426_s10 }
  0x4f   : > { %1175 = vmatprep.subr.bf16.mxu0 %v1324_v2  ;;  %1221 = vmatprep.subr.bf16.mxu1 %v1324_v2  ;;  %v1342_v20 = vld [vmem:[%s1673_s7 + $0x30] sm:$0xff]   ;;  %v1344_v22 = vld [vmem:[%s1673_s7 + $0x38] sm:$0xff]   ;;  %v1699_v24 = vld [vmem:[#allocation7] ss:$0 sm:$0xff]  ;;  %p1429_p6 = pneg %p1428_p4 }
  0x50   : > { %v1343_v21 = vld [vmem:[%s1673_s7 + $0x70] sm:$0xff]   ;;  %v1345_v23 = vld [vmem:[%s1673_s7 + $0x78] sm:$0xff]   ;;  %p1435_p10 = por %p1434_p0, %p1433_p8 }
  0x52   : > { %1176 = vmatpush3.bf16.msra.mxu0 %v1324_v2  ;;  %1229 = vmatpush3.bf16.msra.mxu1 %v1324_v2  ;;  %p1436_p2 = pnand %p1435_p10, %p1429_p6 }
  0x53   : > { %1177 = vmatprep.subr.bf16.mxu0 %v1325_v3  ;;  %1222 = vmatprep.subr.bf16.mxu1 %v1325_v3 }
  0x56   : > { %1178 = vmatpush3.bf16.msra.mxu0 %v1325_v3  ;;  %1230 = vmatpush3.bf16.msra.mxu1 %v1325_v3 }
  0x57   : > { %1179 = vmatprep.subr.bf16.mxu0 %v1326_v6  ;;  %1223 = vmatprep.subr.bf16.mxu1 %v1326_v6 }
  0x5a   : > { %1180 = vmatpush3.bf16.msra.mxu0 %v1326_v6  ;;  %1231 = vmatpush3.bf16.msra.mxu1 %v1326_v6 }
  0x5b   : > { %1181 = vmatprep.subr.bf16.mxu0 %v1327_v7  ;;  %1224 = vmatprep.subr.bf16.mxu1 %v1327_v7 }
  0x5e   : > { %1182 = vmatpush3.bf16.msra.mxu0 %v1327_v7  ;;  %1232 = vmatpush3.bf16.msra.mxu1 %v1327_v7 }
  0x5f   : > { %1183 = vmatprep.subr.bf16.mxu0 %v1328_v8  ;;  %1225 = vmatprep.subr.bf16.mxu1 %v1328_v8 }
  0x62   : > { %1184 = vmatpush3.bf16.msra.mxu0 %v1328_v8  ;;  %1233 = vmatpush3.bf16.msra.mxu1 %v1328_v8 }
  0x63   : > { %1185 = vmatprep.subr.bf16.mxu0 %v1329_v9  ;;  %1226 = vmatprep.subr.bf16.mxu1 %v1329_v9 }
  0x66   : > { %1186 = vmatpush3.bf16.msra.mxu0 %v1329_v9  ;;  %1234 = vmatpush3.bf16.msra.mxu1 %v1329_v9 }
  0x69   : > { %1188 = vmatmul.mubr.bf16.vlgmr.msra.gmra.mxu0 %v1332_v10  ;;  %1204 = vmatmul.mubr.bf16.vlgmr.msra.gmra.mxu1 %v1333_v11 }
  0x6a   : > { %1191 = vmatprep.mubr.bf16.mxu0 %v1334_v12  ;;  %1207 = vmatprep.mubr.bf16.mxu1 %v1335_v13 }
  0x71   : > { %1192 = vmatmul.mubr.bf16.gmra.mxu0 %v1336_v14  ;;  %1208 = vmatmul.mubr.bf16.gmra.mxu1 %v1337_v15 }
  0x72   : > { %1195 = vmatprep.mubr.bf16.mxu0 %v1338_v16  ;;  %1211 = vmatprep.mubr.bf16.mxu1 %v1339_v17 }
  0x79   : > { %1196 = vmatmul.mubr.bf16.gmra.mxu0 %v1340_v18  ;;  %1212 = vmatmul.mubr.bf16.gmra.mxu1 %v1341_v19 }
  0x7a   : > { %1199 = vmatprep.mubr.bf16.mxu0 %v1342_v20  ;;  %1215 = vmatprep.mubr.bf16.mxu1 %v1343_v21 }
  0x81   : > { %1200 = vmatmul.mubr.bf16.gmra.mxu0 %v1344_v22  ;;  %1216 = vmatmul.mubr.bf16.gmra.mxu1 %v1345_v23 }
 0x129   : > { %v1189_v25 = vpop.f32.mrf.mxu0  ;;  %v1205_v26 = vpop.f32.mrf.mxu1 }
 0x12a   : > { %v504_v27 = vadd.f32 %v1189_v25, %v1699_v24  ;;  %v568_v28 = vadd.f32 %v1205_v26, %v1699_v24 }
 0x12b   : > { %v495_v29 = vpop.f32.mrf.mxu0  ;;  %v559_v30 = vpop.f32.mrf.mxu1 }
 0x12c   : > { %v496_v31 = vadd.f32 %v1699_v24, %v495_v29  ;;  %v560_v32 = vadd.f32 %v1699_v24, %v559_v30  ;;  %v624_v37 = vmax.f32 %v504_v27, 0.0  ;;  %v640_v38 = vmax.f32 %v568_v28, 0.0 }
 0x12d   : > { %v1190_v33 = vpop.f32.mrf.mxu0  ;;  %v1206_v34 = vpop.f32.mrf.mxu1 }
 0x12e   : > { %v507_v35 = vadd.f32 %v1190_v33, %v1699_v24  ;;  %v571_v36 = vadd.f32 %v1206_v34, %v1699_v24  ;;  %v622_v45 = vmax.f32 %v496_v31, 0.0  ;;  %v638_v46 = vmax.f32 %v560_v32, 0.0 }
 0x12f   : > { %v498_v39 = vpop.f32.mrf.mxu0  ;;  %v562_v40 = vpop.f32.mrf.mxu1 }
 0x130   : > { %v625_v41 = vmax.f32 %v507_v35, 0.0  ;;  %v641_v42 = vmax.f32 %v571_v36, 0.0  ;;  %v499_v43 = vadd.f32 %v1699_v24, %v498_v39  ;;  %v563_v44 = vadd.f32 %v1699_v24, %v562_v40 }
 0x131   : > { %v1193_v47 = vpop.f32.mrf.mxu0  ;;  %v1209_v48 = vpop.f32.mrf.mxu1 }
 0x132   : > { %v1060_v49 = vpack.c.bf16 %v625_v41, %v624_v37  ;;  %v1100_v50 = vpack.c.bf16 %v641_v42, %v640_v38  ;;  %v623_v51 = vmax.f32 %v499_v43, 0.0  ;;  %v639_v52 = vmax.f32 %v563_v44, 0.0 }
 0x133   : > { %v520_v53 = vadd.f32 %v1193_v47, %v1699_v24  ;;  %v584_v54 = vadd.f32 %v1209_v48, %v1699_v24  ;;  %v511_v55 = vpop.f32.mrf.mxu0  ;;  %v575_v56 = vpop.f32.mrf.mxu1 }
 0x134   : > { %1132 = vst [vmem:[%s1713_s20 + $0x8] sm:$0xff] %v1060_v49   ;;  %1140 = vst [vmem:[%s1713_s20 + $0x48] sm:$0xff] %v1100_v50   ;;  %v1055_v57 = vpack.c.bf16 %v623_v51, %v622_v45  ;;  %v1095_v58 = vpack.c.bf16 %v639_v52, %v638_v46  ;;  %v512_v59 = vadd.f32 %v1699_v24, %v511_v55 }
 0x135   : > { %v576_v60 = vadd.f32 %v1699_v24, %v575_v56  ;;  %v1194_v61 = vpop.f32.mrf.mxu0  ;;  %v1210_v62 = vpop.f32.mrf.mxu1  ;;  %v628_v1 = vmax.f32 %v520_v53, 0.0  ;;  %v644_v2 = vmax.f32 %v584_v54, 0.0 }
 0x136   : > { %1056 = vst [vmem:[%s1713_s20] sm:$0xff] %v1055_v57   ;;  %1139 = vst [vmem:[%s1713_s20 + $0x40] sm:$0xff] %v1095_v58   ;;  %v523_v63 = vadd.f32 %v1194_v61, %v1699_v24  ;;  %v587_v0 = vadd.f32 %v1210_v62, %v1699_v24  ;;  %v626_v9 = vmax.f32 %v512_v59, 0.0 }
 0x137   : > { %v514_v3 = vpop.f32.mrf.mxu0  ;;  %v578_v4 = vpop.f32.mrf.mxu1  ;;  %v642_v10 = vmax.f32 %v576_v60, 0.0 }
 0x138   : > { %v629_v5 = vmax.f32 %v523_v63, 0.0  ;;  %v645_v6 = vmax.f32 %v587_v0, 0.0  ;;  %v515_v7 = vadd.f32 %v1699_v24, %v514_v3  ;;  %v579_v8 = vadd.f32 %v1699_v24, %v578_v4 }
 0x139   : > { %v1197_v11 = vpop.f32.mrf.mxu0  ;;  %v1213_v12 = vpop.f32.mrf.mxu1 }
 0x13a   : > { %v1070_v13 = vpack.c.bf16 %v629_v5, %v628_v1  ;;  %v1110_v14 = vpack.c.bf16 %v645_v6, %v644_v2  ;;  %v627_v15 = vmax.f32 %v515_v7, 0.0  ;;  %v643_v16 = vmax.f32 %v579_v8, 0.0 }
 0x13b   : > { %v536_v17 = vadd.f32 %v1197_v11, %v1699_v24  ;;  %v600_v18 = vadd.f32 %v1213_v12, %v1699_v24  ;;  %v527_v19 = vpop.f32.mrf.mxu0  ;;  %v591_v20 = vpop.f32.mrf.mxu1 }
 0x13c   : > { %1134 = vst [vmem:[%s1713_s20 + $0x18] sm:$0xff] %v1070_v13   ;;  %1142 = vst [vmem:[%s1713_s20 + $0x58] sm:$0xff] %v1110_v14   ;;  %v1065_v21 = vpack.c.bf16 %v627_v15, %v626_v9  ;;  %v1105_v22 = vpack.c.bf16 %v643_v16, %v642_v10  ;;  %v528_v23 = vadd.f32 %v1699_v24, %v527_v19 }
 0x13d   : > { %v592_v25 = vadd.f32 %v1699_v24, %v591_v20  ;;  %v1198_v26 = vpop.f32.mrf.mxu0  ;;  %v1214_v27 = vpop.f32.mrf.mxu1  ;;  %v632_v30 = vmax.f32 %v536_v17, 0.0  ;;  %v648_v31 = vmax.f32 %v600_v18, 0.0 }
 0x13e   : > { %1133 = vst [vmem:[%s1713_s20 + $0x10] sm:$0xff] %v1065_v21   ;;  %1141 = vst [vmem:[%s1713_s20 + $0x50] sm:$0xff] %v1105_v22   ;;  %v539_v28 = vadd.f32 %v1198_v26, %v1699_v24  ;;  %v603_v29 = vadd.f32 %v1214_v27, %v1699_v24  ;;  %v630_v38 = vmax.f32 %v528_v23, 0.0 }
 0x13f   : > { %v530_v32 = vpop.f32.mrf.mxu0  ;;  %v594_v33 = vpop.f32.mrf.mxu1  ;;  %v646_v39 = vmax.f32 %v592_v25, 0.0 }
 0x140   : > { %v633_v34 = vmax.f32 %v539_v28, 0.0  ;;  %v649_v35 = vmax.f32 %v603_v29, 0.0  ;;  %v531_v36 = vadd.f32 %v1699_v24, %v530_v32  ;;  %v595_v37 = vadd.f32 %v1699_v24, %v594_v33 }
 0x141   : > { %v1201_v40 = vpop.f32.mrf.mxu0  ;;  %v1217_v41 = vpop.f32.mrf.mxu1 }
 0x142   : > { %v1080_v42 = vpack.c.bf16 %v633_v34, %v632_v30  ;;  %v1120_v43 = vpack.c.bf16 %v649_v35, %v648_v31  ;;  %v631_v44 = vmax.f32 %v531_v36, 0.0  ;;  %v647_v45 = vmax.f32 %v595_v37, 0.0 }
 0x143   : > { %v552_v46 = vadd.f32 %v1201_v40, %v1699_v24  ;;  %v616_v47 = vadd.f32 %v1217_v41, %v1699_v24  ;;  %v543_v48 = vpop.f32.mrf.mxu0  ;;  %v607_v49 = vpop.f32.mrf.mxu1 }
 0x144   : > { %1136 = vst [vmem:[%s1713_s20 + $0x28] sm:$0xff] %v1080_v42   ;;  %1144 = vst [vmem:[%s1713_s20 + $0x68] sm:$0xff] %v1120_v43   ;;  %v1075_v50 = vpack.c.bf16 %v631_v44, %v630_v38  ;;  %v1115_v51 = vpack.c.bf16 %v647_v45, %v646_v39  ;;  %v544_v52 = vadd.f32 %v1699_v24, %v543_v48 }
 0x145   : > { %v608_v53 = vadd.f32 %v1699_v24, %v607_v49  ;;  %v1202_v54 = vpop.f32.mrf.mxu0  ;;  %v1218_v55 = vpop.f32.mrf.mxu1  ;;  %v636_v58 = vmax.f32 %v552_v46, 0.0  ;;  %v652_v59 = vmax.f32 %v616_v47, 0.0 }
 0x146   : > { %1135 = vst [vmem:[%s1713_s20 + $0x20] sm:$0xff] %v1075_v50   ;;  %1143 = vst [vmem:[%s1713_s20 + $0x60] sm:$0xff] %v1115_v51   ;;  %v555_v56 = vadd.f32 %v1202_v54, %v1699_v24  ;;  %v619_v57 = vadd.f32 %v1218_v55, %v1699_v24  ;;  %v634_v2 = vmax.f32 %v544_v52, 0.0 }
 0x147   : > { %v546_v60 = vpop.f32.mrf.mxu0  ;;  %v610_v61 = vpop.f32.mrf.mxu1  ;;  %v650_v3 = vmax.f32 %v608_v53, 0.0 }
 0x148   : > { %v637_v62 = vmax.f32 %v555_v56, 0.0  ;;  %v653_v63 = vmax.f32 %v619_v57, 0.0  ;;  %v547_v0 = vadd.f32 %v1699_v24, %v546_v60  ;;  %v611_v1 = vadd.f32 %v1699_v24, %v610_v61 }
 0x14a   : > { %v1090_v4 = vpack.c.bf16 %v637_v62, %v636_v58  ;;  %v1130_v5 = vpack.c.bf16 %v653_v63, %v652_v59  ;;  %v635_v6 = vmax.f32 %v547_v0, 0.0  ;;  %v651_v7 = vmax.f32 %v611_v1, 0.0 }
 0x14c   : > { %1138 = vst [vmem:[%s1713_s20 + $0x38] sm:$0xff] %v1090_v4   ;;  %1146 = vst [vmem:[%s1713_s20 + $0x78] sm:$0xff] %v1130_v5   ;;  %v1085_v24 = vpack.c.bf16 %v635_v6, %v634_v2  ;;  %v1125_v8 = vpack.c.bf16 %v651_v7, %v650_v3 }
 0x14e   : > { %1137 = vst [vmem:[%s1713_s20 + $0x30] sm:$0xff] %v1085_v24   ;;  %1145 = vst [vmem:[%s1713_s20 + $0x70] sm:$0xff] %v1125_v8  }
 0x14f   : > { %1439 = shalt.err (!%p1436_p2)
}
 0x150   : > { %s1440_s19 = scalar_lea.hbm %s1754_s9, 2048  ;;  %s1444_s4 = scalar_lea.hbm %s1810_s3, 75776 }
 0x151   : > { %p1441_p9 = scmp.ne.s32.totalorder %s1754_s9, %s1440_s19  ;;  %p1445_p13 = scmp.lt.s32.totalorder %s1754_s9, %s1810_s3 }
 0x152   : > { %p1446_p7 = scmp.lt.s32.totalorder %s1444_s4, %s1440_s19 }
 0x153   : > { %p1442_p11 = pnand %p1441_p9, %p1637_p5 }
 0x154   : > { %p1447_p3 = por %p1446_p7, %p1445_p13 }
 0x155   : > { %p1443_p12 = pneg %p1442_p11 }
 0x157   : > { %p1448_p1 = pnand %p1447_p3, %p1443_p12 }
 0x159   : > { %1451 = shalt.err (!%p1448_p1)
}
 0x15a   : > { %s1518_s20 = smov 64   ;;  %s1519_s22 = smov 4  }
 0x15b   : > { %1245 = dma.vmem_to_hbm [thread:$0]  (%p1637_p5), %s1756_s24, 2048, %s1754_s9, %s815_s15, %s1518_s20, %s1518_s20, %s1519_s22  }
 0x15c PF: > { %p1267_p4 = scmp.ge.s32.totalorder %s1510_s17, 2  ;;  %s844_s5 = sand.u32 1, %s1490_s12  }
 0x15d   : > { %p1821_p6 = scmp.ne.s32.totalorder %s1815_s23, 0  ;;  %s845_s8 = scalar_lea.sflag [#allocation4], %s844_s5 }
 0x15f   : > { %p1259_p8 = pnand %p1267_p4, %p1821_p6 }
 0x161   : > { %p1260_p0 = pneg %p1259_p8 }
 0x163   : > { %1485 = dma.done.wait (%p1260_p0), %s845_s8, 2048  }
 0x164   : > { %1487 = vsyncadd (%p1260_p0), %s845_s8, 4294965248  ;;  %s20_s17 = sadd.s32 1, %s1510_s17   ;;  %s1822_s12 = smov %s1494_s13 }
 0x165   : > { %p17_p10 = scmp.ge.s32.totalorder %s20_s17, 39   ;;  %s1823_s13 = smov %s1498_s14 }
 0x166   : > { %s1824_s14 = smov %s1646_s30  ;;  %s1825_s15 = smov %s1506_s16 }
 0x167   : > { %s1826_s16 = smov %s1828_s18  ;;  %19 = sbr.rel (!%p17_p10) target bundleno = 7 (0x7), region = 87 }
 0x16c   :  { %850 = vsyncpa [#allocation3], 1 }
 0x16d   :  { %852 = vsyncpa [#allocation3 + $0x1], 1 }
 0x16e   :  { %853 = vsyncpa [#allocation6], 1 }
 0x16f   :  { %854 = vsyncpa [#allocation4], 1 }
 0x170   :  { %856 = vsyncpa [#allocation4 + $0x1], 1 }

</bundles_post_ra>
